<compile_context>
chip_gen: v5e
topology: v5e:2x2
jax: 0.10.0
libtpu: 0.0.40
codegen_flags: <defaults>
</compile_context>

<pallas_src>
import jax
import jax.numpy as jnp
from jax.experimental import pallas as pl
from jax.experimental.pallas import tpu as pltpu


def _dma_copy_kernel(x_ref, o_ref, sem):
    # Whole-ref HBM -> HBM copy.  A single large contiguous descriptor streams
    # at the HBM roofline, so chunked/overlapped DMAs are unnecessary here.
    cp = pltpu.make_async_copy(x_ref, o_ref, sem)
    cp.start()
    cp.wait()


def dummy_transformer_block(x: jax.Array, *, min_kernel_bytes: int = 1 << 20) -> jax.Array:
    """Pallas equivalent of DummyTransformerBlock.forward (identity)."""
    n = x.size
    if n == 0 or n * jnp.dtype(x.dtype).itemsize < min_kernel_bytes:
        # Identity: for small (or empty) inputs the fastest kernel is no kernel.
        return x

    return pl.pallas_call(
        _dma_copy_kernel,
        out_shape=jax.ShapeDtypeStruct(x.shape, x.dtype),
        in_specs=[pl.BlockSpec(memory_space=pl.ANY)],
        out_specs=pl.BlockSpec(memory_space=pl.ANY),
        scratch_shapes=[pltpu.SemaphoreType.DMA(())],
        input_output_aliases={0: 0},  # allow buffer reuse under donation
    )(x)


if __name__ == "__main__":
    key = jax.random.PRNGKey(0)

    # Transformer-block-shaped input: [batch, seq, emb].  min_kernel_bytes=0
    # forces the DMA kernel path even at this small test size.
    x = jax.random.normal(key, (2, 8, 32), dtype=jnp.float32)
    y = dummy_transformer_block(x, min_kernel_bytes=0)
    jax.block_until_ready(y)
    assert y.shape == x.shape and y.dtype == x.dtype
    assert bool(jnp.all(y == x))

    # Non-128-divisible last dim: the DMA path handles it with no fallback.
    x2 = jax.random.normal(key, (2, 8, 30), dtype=jnp.float32)
    y2 = dummy_transformer_block(x2, min_kernel_bytes=0)
    jax.block_until_ready(y2)
    assert y2.shape == x2.shape and bool(jnp.all(y2 == x2))

    # Default path: small input short-circuits the kernel entirely.
    y3 = dummy_transformer_block(x)
    jax.block_until_ready(y3)
    assert bool(jnp.all(y3 == x))

    print("KERNEL_OK")
</pallas_src>

<mosaic_0001>
module attributes {stable_mosaic.version = 11 : i64} {
  func.func @_dma_copy_kernel(%arg0: memref<2x8x32xf32, #tpu.memory_space<any>>, %arg1: memref<2x8x32xf32, #tpu.memory_space<any>>, %arg2: memref<!tpu.dma_semaphore, #tpu.memory_space<semaphore_mem>>) attributes {dimension_semantics = [], scalar_prefetch = 0 : i64, scratch_operands = 1 : i64, tpu.core_type = #tpu.core_type<tc>} {
    tpu.enqueue_dma source(%arg0 : memref<2x8x32xf32, #tpu.memory_space<any>>) target(%arg1 : memref<2x8x32xf32, #tpu.memory_space<any>>) target_semaphore(%arg2 : memref<!tpu.dma_semaphore, #tpu.memory_space<semaphore_mem>>)
    tpu.wait_dma2 semaphore(%arg2 : memref<!tpu.dma_semaphore, #tpu.memory_space<semaphore_mem>>) src(%arg0 : memref<2x8x32xf32, #tpu.memory_space<any>>) dst(%arg1 : memref<2x8x32xf32, #tpu.memory_space<any>>)
    return
  }
}

</mosaic_0001>

<bundles_post_ra>
// kernel: tpu_custom_call.1
= control target key start
LH: loop header
LB: loop body
LE: loop exit
PB: predicated region body
PF: predicated region fallthrough
CT: control target
= control target key end

     0   :  { %s33_s12 = smov [#allocation2]   ;;  %s34_s13 = smov [#allocation3]   ;;  %s52_s0 = inlined_call_operand.hbm [shape: f32[2,8,32], index: 0, kind: input, shape index: {}, may-alias: {0,1}]   ;;  %s53_s1 = inlined_call_operand.hbm [shape: f32[2,8,32], index: 1, kind: output, shape index: {}, may-alias: {0,1}]  }
   0x1   :  { %s10_s8 = sshll.u32 %s52_s0, 4  ;;  %s12_s11 = sshll.u32 %s53_s1, 4  ;;  %s11_s8 = int_to_ptr.hbm [resolvable:$true] %s10_s8  ;;  %s13_s11 = int_to_ptr.hbm [resolvable:$true] %s12_s11 }
   0x2   :  { %s35_s14 = smov 0  }
   0x3   :  { %16 = dma.general %s11_s8, 256, %s13_s11, %s33_s12, %s34_s13, [#allocation4], %s35_s14, 0  }
   0x4   :  { %31 = dma.done.wait [#allocation2], 256 }
   0x5   :  { %32 = vsyncadd [#allocation2], 4294967040 }
   0x6   :  { %21 = vsyncmov [#allocation2] }
   0x9   :  { %s22_s15 = vpop.sfrf %21 }
   0xa   :  { %p27_p0 = scmp.ne.s32.totalorder %s22_s15, 0 }
   0xc   :  { %26 = shalt.err (%p27_p0)  }

</bundles_post_ra>
